<compile_context>
chip_gen: v6e
topology: v6e:2x2x1
jax: 0.10.0
libtpu: 0.0.40
codegen_flags: <defaults>
</compile_context>

<pallas_src>
import jax
import jax.numpy as jnp
from jax.experimental import pallas as pl
from jax.experimental.pallas import tpu as pltpu


def _token_embed_kernel(tok_ref, w_ref, vid_ref, out_ref):
    # tok_ref : VMEM int32[TN, 1]   token ids for this tile
    # w_ref   : VMEM f32[2, C]      row 0 = weight[0] tiled across V (chunk),
    #                               row 1 = weight[1] tiled across V (chunk)
    # vid_ref : VMEM int32[1, C]    vocab id of each lane column (col // E)
    # out_ref : VMEM f32[TN, C]     lane-dense output tile
    onehot = vid_ref[...] == tok_ref[...]                    # (TN, C) broadcast compare
    out_ref[...] = jnp.where(onehot, w_ref[1:2, :], w_ref[0:1, :])


def token_embedding(x, weight):
    """x: int tokens of shape (B, S); weight: (V, E).
    Returns (B, S, V, E) matching TokenEmbedding.forward."""
    B, S = x.shape
    V, E = weight.shape
    # The op reads weight[0] and weight[1] only (one-hot values are {0, 1});
    # PyTorch itself would index out of range for V < 2, so require V >= 2.
    assert V >= 2, "TokenEmbedding semantics require vocab_size >= 2"

    N = B * S
    VE = V * E
    itemsize = jnp.dtype(weight.dtype).itemsize

    # ---- generation-aware VMEM plan -------------------------------------
    try:
        vmem_cap = int(pltpu.get_tpu_info().vmem_capacity_bytes)
    except Exception:
        vmem_cap = 64 << 20                          # conservative (v7x per-TC)
    vmem_limit = min(96 << 20, (vmem_cap * 3) // 4)  # leave compiler headroom
    tile_budget = vmem_limit // 4                    # one output buffer (x2 double-buffered)

    # ---- lane-chunk size C (multiple of 128, or the full V*E) ------------
    # Minimum 8-row output tile + resident (2,C) weights + (1,C) vocab ids,
    # all double-buffered, must fit the budget: (8 + 6) * C * itemsize.
    c_cap = max(128, (tile_budget // (14 * itemsize)) // 128 * 128)
    C = VE if VE <= c_cap else c_cap

    # ---- token-tile size TN (multiple of 8) ------------------------------
    rows_cap = max(8, (tile_budget // (C * itemsize)) // 8 * 8)
    # keep >= 2 token tiles whenever possible so both v7x TCs get work
    half_rows = pl.cdiv(pl.cdiv(N, 2), 8) * 8
    TN = max(8, min(rows_cap, half_rows))

    tokens = x.reshape(N, 1).astype(jnp.int32)
    # Only rows 0/1 of weight are ever read; tile them across V so the kernel
    # selects against lane-dense rows (2 * V*E * itemsize bytes, negligible).
    w01 = jnp.tile(weight[0:2, :], (1, V))                           # (2, V*E)
    vocab_ids = (jnp.arange(VE, dtype=jnp.int32) // E).reshape(1, VE)

    grid = (pl.cdiv(N, TN), pl.cdiv(VE, C))

    cost = pl.CostEstimate(
        flops=N * VE,                      # one compare + select per output elem
        transcendentals=0,
        bytes_accessed=N * VE * itemsize + N * 4 + 3 * VE * 4,
    )

    out = pl.pallas_call(
        _token_embed_kernel,
        out_shape=jax.ShapeDtypeStruct((N, VE), weight.dtype),
        grid_spec=pltpu.PrefetchScalarGridSpec(
            num_scalar_prefetch=0,
            grid=grid,
            in_specs=[
                pl.BlockSpec((TN, 1), lambda i, j: (i, 0)),   # per-tile token ids
                pl.BlockSpec((2, C), lambda i, j: (0, j)),    # tiled weight rows
                pl.BlockSpec((1, C), lambda i, j: (0, j)),    # lane -> vocab id
            ],
            out_specs=pl.BlockSpec((TN, C), lambda i, j: (i, j)),
        ),
        compiler_params=pltpu.CompilerParams(
            dimension_semantics=("parallel", "parallel"),
            vmem_limit_bytes=vmem_limit,
        ),
        cost_estimate=cost,
    )(tokens, w01, vocab_ids)

    return out.reshape(B, S, V, E)


def _reference(x, weight):
    V = weight.shape[0]
    onehot = (x[..., None] == jnp.arange(V, dtype=x.dtype)).astype(jnp.int32)  # (B,S,V)
    return jnp.take(weight, onehot, axis=0)                                    # (B,S,V,E)


if __name__ == "__main__":
    key = jax.random.PRNGKey(0)
    k_w, k_x = jax.random.split(key)

    vocab_size, embed_dim = 16, 32
    B, S = 2, 8

    # nn.init.uniform_(weight, -0.1, +0.1), deterministic
    weight = jax.random.uniform(
        k_w, (vocab_size, embed_dim), dtype=jnp.float32, minval=-0.1, maxval=0.1
    )
    x = jax.random.randint(k_x, (B, S), 0, vocab_size, dtype=jnp.int32)

    out = token_embedding(x, weight)
    out = jax.block_until_ready(out)

    ref = _reference(x, weight)
    assert out.shape == (B, S, vocab_size, embed_dim), out.shape
    assert jnp.allclose(out, ref), "mismatch vs reference"

    print("KERNEL_OK")
</pallas_src>

<mosaic_0001>
module attributes {stable_mosaic.version = 11 : i64} {
  func.func @_token_embed_kernel(%arg0: i32, %arg1: i32, %arg2: memref<8x1xi32, #tpu.memory_space<vmem>>, %arg3: memref<2x512xf32, #tpu.memory_space<vmem>>, %arg4: memref<1x512xi32, #tpu.memory_space<vmem>>, %arg5: memref<8x512xf32, #tpu.memory_space<vmem>>) attributes {dimension_semantics = [#tpu.dimension_semantics<parallel>, #tpu.dimension_semantics<parallel>], iteration_bounds = array<i64: 2, 1>, scalar_prefetch = 0 : i64, scratch_operands = 0 : i64, tpu.core_type = #tpu.core_type<tc>, window_params = [{transform_indices = @transform_0, window_bounds = array<i64: 8, 1>}, {transform_indices = @transform_1, window_bounds = array<i64: 2, 512>}, {transform_indices = @transform_2, window_bounds = array<i64: 1, 512>}, {transform_indices = @transform_3, window_bounds = array<i64: 8, 512>}]} {
    %c0 = arith.constant 0 : index
    %c0_0 = arith.constant 0 : index
    %0 = vector.load %arg4[%c0, %c0_0] : memref<1x512xi32, #tpu.memory_space<vmem>>, vector<1x512xi32>
    %c0_1 = arith.constant 0 : index
    %c0_2 = arith.constant 0 : index
    %1 = vector.load %arg2[%c0_1, %c0_2] : memref<8x1xi32, #tpu.memory_space<vmem>>, vector<8x1xi32>
    %2 = vector.broadcast %0 : vector<1x512xi32> to vector<8x512xi32>
    %3 = vector.broadcast %1 : vector<8x1xi32> to vector<8x512xi32>
    %4 = arith.cmpi eq, %2, %3 : vector<8x512xi32>
    %c1 = arith.constant 1 : index
    %c0_3 = arith.constant 0 : index
    %5 = vector.load %arg3[%c1, %c0_3] : memref<2x512xf32, #tpu.memory_space<vmem>>, vector<1x512xf32>
    %c0_4 = arith.constant 0 : index
    %c0_5 = arith.constant 0 : index
    %6 = vector.load %arg3[%c0_4, %c0_5] : memref<2x512xf32, #tpu.memory_space<vmem>>, vector<1x512xf32>
    %7 = vector.shape_cast %5 : vector<1x512xf32> to vector<1x512xf32>
    %8 = vector.broadcast %7 : vector<1x512xf32> to vector<8x512xf32>
    %9 = vector.shape_cast %6 : vector<1x512xf32> to vector<1x512xf32>
    %10 = vector.broadcast %9 : vector<1x512xf32> to vector<8x512xf32>
    %11 = arith.select %4, %8, %10 : vector<8x512xi1>, vector<8x512xf32>
    %c0_6 = arith.constant 0 : index
    %c0_7 = arith.constant 0 : index
    %12 = vector.load %arg5[%c0_6, %c0_7] : memref<8x512xf32, #tpu.memory_space<vmem>>, vector<8x512xf32>
    tpu.vector_store %arg5[%c0_6, %c0_7], %11 {strides = array<i32>} : memref<8x512xf32, #tpu.memory_space<vmem>>, vector<8x512xf32>,
    return
  }
  func.func @transform_0(%arg0: i32, %arg1: i32) -> (i32, i32) {
    %c0_i32 = arith.constant 0 : i32
    %c0_i32_0 = arith.constant 0 : i32
    return %arg0, %c0_i32 : i32, i32
  }
  func.func @transform_1(%arg0: i32, %arg1: i32) -> (i32, i32) {
    %c0_i32 = arith.constant 0 : i32
    %c0_i32_0 = arith.constant 0 : i32
    return %c0_i32, %arg1 : i32, i32
  }
  func.func @transform_2(%arg0: i32, %arg1: i32) -> (i32, i32) {
    %c0_i32 = arith.constant 0 : i32
    %c0_i32_0 = arith.constant 0 : i32
    return %c0_i32, %arg1 : i32, i32
  }
  func.func @transform_3(%arg0: i32, %arg1: i32) -> (i32, i32) {
    %c0_i32 = arith.constant 0 : i32
    return %arg0, %arg1 : i32, i32
  }
}

</mosaic_0001>

<bundles_post_ra>
// kernel: tpu_custom_call.1
= control target key start
LH: loop header
LB: loop body
LE: loop exit
PB: predicated region body
PF: predicated region fallthrough
CT: control target
= control target key end

     0   :  { %8 = vsyncpa [#allocation3], 0  ;;  %s711_s0 = inlined_call_operand.vmem [shape: s32[16,1], index: 0, kind: input, shape index: {}]   ;;  %s712_s1 = inlined_call_operand.vmem [shape: f32[2,512], index: 1, kind: input, shape index: {}]   ;;  %s713_s2 = inlined_call_operand.vmem [shape: s32[1,512], index: 2, kind: input, shape index: {}]   ;;  %s714_s3 = inlined_call_operand.hbm [shape: f32[16,512], index: 3, kind: output, shape index: {}]  }
   0x1   :  { %10 = vsyncpa [#allocation3 + $0x1], 0  ;;  %s587_s12 = smov 0   ;;  %s589_s13 = smov 0  }
   0x2   :  { %s591_s14 = smov 0   ;;  %s593_s15 = smov 0  }
   0x3   :  { %s595_s16 = smov 0   ;;  %s597_s17 = smov 0  }
   0x4 LB: > { %s414_s18 = sadd.s32 4294967295, %s563_s17   ;;  %s415_s19 = sadd.s32 4294967294, %s563_s17   ;;  %s563_s17 = sphi %s597_s17, %s16_s17   ;;  %s559_s16 = sphi %s595_s16, %s721_s16   ;;  %s555_s15 = sphi %s593_s15, %s720_s15   ;;  %s551_s14 = sphi %s591_s14, %s719_s14   ;;  %s547_s13 = sphi %s589_s13, %s718_s13   ;;  %s543_s12 = sphi %s587_s12, %s717_s12  }
   0x5   : > { %s28_s20 = sadd.s32 1, %s559_s16  ;;  %s115_s21 = sadd.s32 1, %s551_s14 }
   0x6   : > { %p30_p0 = scmp.ge.s32.totalorder %s28_s20, 2  ;;  %p125_p1 = scmp.ne.s32.totalorder %s551_s14, %s547_s13 }
   0x7   : > { %p126_p2 = scmp.eq.s32.totalorder %s414_s18, 1  ;;  %p131_p3 = scmp.ne.s32.totalorder %s547_s13, %s543_s12 }
   0x8   : > { %s723_s20 = smov (%p30_p0, %s28_s20), 0  ;;  %p132_p5 = scmp.eq.s32.totalorder %s415_s19, 1 }
   0x9   : > { %p627_p4 = por %p126_p2, %p125_p1  ;;  %s110_s23 = ssub.s32 %s559_s16, %s723_s20 }
   0xa   : > { %p420_p6 = scmp.ge.s32.totalorder %s563_s17, 1  ;;  %p113_p7 = scmp.eq.s32.totalorder %s110_s23, 0 }
   0xb   : > { %p634_p8 = por %p132_p5, %p131_p3  ;;  %p174_p9 = scmp.lt.s32.totalorder %s563_s17, 3 }
   0xc   : > { %s640_s25 = scalar_select %p113_p7, %s551_s14, %s115_s21  }
   0xd   : > { %p175_p10 = pnand %p420_p6, %p174_p9 }
   0xe   : > { %p206_p11 = scmp.lt.s32.totalorder (!%p175_p10), %s555_s15, 1  ;;  %s203_s4 = sand.u32 (!%p175_p10), 1, %s547_s13  }
   0xf   : > { %178 = sbr.rel (%p175_p10) target bundleno = 165 (0xa5), region = 32  ;;  %s421_s5 = sshll.u32 (!%p175_p10), %s203_s4, 5 }
  0x10   : > { %s429_s18 = sshll.u32 (!%p175_p10), %s555_s15, 9  ;;  %s205_s19 = scalar_lea.vmem (!%p175_p10), [#allocation2], %s421_s5 }
  0x11   : > { %s317_s21 = sshll.u32 (!%p175_p10), %s205_s19, 4  ;;  %s566_s29 = smov (!%p175_p10), [#allocation2]   ;;  %s665_s21 = int_to_ptr.vmem [resolvable:$true] %s317_s21 }
  0x12   : > { %s487_s28 = scalar_lea.vmem (!%p175_p10), %s665_s21, 512 }
  0x13   : > { %p488_p12 = scmp.ne.s32.totalorder (!%p175_p10), %s665_s21, %s487_s28 }
  0x14   : > { %v565_v0 = vmov 0   ;;  %s207_s26 = scalar_select %p206_p11, %s555_s15, 1  ;;  %v224_v2 = vlaneseq  ;;  %v222_v8 = vld [vmem:[%s713_s2] sm:$0xf] }
  0x15   : > { %486 = vset.pattern.permute.xlu0 %v565_v0  ;;  %v423_v9 = vld [vmem:[%s712_s1 + $0x1] ss:$2 sm:$0xf]  ;;  %v249_v10 = vld [vmem:[%s712_s1] ss:$2 sm:$0xf]  ;;  %p489_p13 = pnand %p488_p12, %p627_p4 }
  0x16   : > { %s422_s27 = sshll.u32 %s207_s26, 3  ;;  %v225_v3 = vshrl.u32 %v224_v2, 7  ;;  %s301_s15 = scalar_lea.sflag [#allocation3], %s203_s4 }
  0x17   : > { %s209_s30 = scalar_lea.vmem %s711_s0, %s422_s27  ;;  %s663_s27 = scalar_lea.hbm %s714_s3, %s429_s18 }
  0x18   : > { %v223_v1 = vld [vmem:[%s209_s30] sm:$0xff]  ;;  %v226_v4 = vsub.s32 0, %v225_v3  ;;  %v230_v5 = vsub.s32 1, %v225_v3  ;;  %v234_v6 = vsub.s32 2, %v225_v3  ;;  %v238_v7 = vsub.s32 3, %v225_v3  ;;  %p490_p0 = pneg %p489_p13  ;;  %s491_s30 = sshll.u32 %s566_s29, 4  ;;  %s492_s30 = int_to_ptr.vmem [resolvable:$false] %s491_s30 }
  0x19   : > { %241 = vperm.xlu0 %486, %v223_v1   ;;  %s493_s5 = scalar_lea.vmem %s492_s30, 1024  ;;  %p494_p1 = scmp.lt.s32.totalorder %s665_s21, %s492_s30 }
  0x1a   : > { %v227_v11 = vrot.slane %v222_v8, %v226_v4  ;;  %v231_v12 = vrot.slane %v222_v8, %v230_v5  ;;  %v235_v13 = vrot.slane %v222_v8, %v234_v6  ;;  %v239_v14 = vrot.slane %v222_v8, %v238_v7  ;;  %p495_p2 = scmp.lt.s32.totalorder %s493_s5, %s487_s28 }
  0x1b   : > { %v254_v15 = vrot.slane %v423_v9, %v226_v4  ;;  %v258_v16 = vrot.slane %v423_v9, %v230_v5  ;;  %v262_v17 = vrot.slane %v423_v9, %v234_v6  ;;  %v266_v18 = vrot.slane %v423_v9, %v238_v7 }
  0x1c   : > { %v275_v19 = vrot.slane %v249_v10, %v226_v4  ;;  %v279_v20 = vrot.slane %v249_v10, %v230_v5  ;;  %v283_v21 = vrot.slane %v249_v10, %v234_v6  ;;  %v287_v22 = vrot.slane %v249_v10, %v238_v7  ;;  %p496_p3 = por %p495_p2, %p494_p1 }
  0x1e   : > { %p497_p5 = pnand %p496_p3, %p490_p0 }
  0x94   : > { %v242_v23 = vpop.permute.xlu0 %241 }
  0x95   : > { %vm243_vm0 = vcmp.eq.s32.totalorder %v227_v11, %v242_v23  ;;  %vm244_vm1 = vcmp.eq.s32.totalorder %v231_v12, %v242_v23  ;;  %vm245_vm2 = vcmp.eq.s32.totalorder %v235_v13, %v242_v23  ;;  %vm246_vm3 = vcmp.eq.s32.totalorder %v239_v14, %v242_v23 }
  0x96   : > { %v292_v24 = vsel %vm243_vm0, %v254_v15, %v275_v19  ;;  %v293_v25 = vsel %vm244_vm1, %v258_v16, %v279_v20  ;;  %v294_v26 = vsel %vm245_vm2, %v262_v17, %v283_v21  ;;  %v295_v27 = vsel %vm246_vm3, %v266_v18, %v287_v22 }
  0x97   : > { %296 = vst [vmem:[%s205_s19] sm:$0xff] %v292_v24  ;;  %297 = vst [vmem:[%s205_s19 + $0x8] sm:$0xff] %v293_v25 }
  0x98   : > { %298 = vst [vmem:[%s205_s19 + $0x10] sm:$0xff] %v294_v26  ;;  %299 = vst [vmem:[%s205_s19 + $0x18] sm:$0xff] %v295_v27 }
  0x99   : > { %500 = shalt.err (!%p497_p5)
}
  0x9a   : > { %s501_s6 = scalar_lea.hbm %s663_s27, 512  ;;  %s505_s8 = scalar_lea.hbm %s714_s3, 1024 }
  0x9b   : > { %p502_p6 = scmp.ne.s32.totalorder %s663_s27, %s501_s6  ;;  %p506_p10 = scmp.lt.s32.totalorder %s663_s27, %s714_s3 }
  0x9c   : > { %p507_p11 = scmp.lt.s32.totalorder %s505_s8, %s501_s6 }
  0x9d   : > { %p503_p7 = pnand %p502_p6, %p627_p4 }
  0x9e   : > { %p508_p12 = por %p507_p11, %p506_p10 }
  0x9f   : > { %p504_p9 = pneg %p503_p7 }
  0xa1   : > { %p509_p13 = pnand %p508_p12, %p504_p9 }
  0xa3   : > { %512 = shalt.err (!%p509_p13)
}
  0xa4   : > { %430 = dma.vmem_to_hbm [thread:$0]  (%p627_p4), %s665_s21, 512, %s663_s27, %s301_s15  }
  0xa5 PF: > { %p436_p0 = scmp.ge.s32.totalorder %s563_s17, 2  ;;  %s329_s11 = sand.u32 1, %s543_s12  }
  0xa6   : > { %s330_s18 = scalar_lea.sflag [#allocation3], %s329_s11 }
  0xa7   : > { %p433_p1 = pnand %p436_p0, %p634_p8 }
  0xa9   : > { %p434_p2 = pneg %p433_p1 }
  0xab   : > { %538 = dma.done.wait (%p434_p2), %s330_s18, 512  }
  0xac   : > { %540 = vsyncadd (%p434_p2), %s330_s18, 4294966784  ;;  %s16_s17 = sadd.s32 1, %s563_s17   ;;  %s717_s12 = smov %s547_s13 }
  0xad   : > { %p13_p3 = scmp.ge.s32.totalorder %s16_s17, 4   ;;  %s718_s13 = smov %s551_s14 }
  0xae   : > { %s719_s14 = smov %s640_s25  ;;  %s720_s15 = smov %s559_s16 }
  0xaf   : > { %s721_s16 = smov %s723_s20  ;;  %15 = sbr.rel (!%p13_p3) target bundleno = 4 (0x4), region = 74 }
  0xb4   :  { %335 = vsyncpa [#allocation3], 1 }
  0xb5   :  { %337 = vsyncpa [#allocation3 + $0x1], 1 }

</bundles_post_ra>
